<compile_context>
chip_gen: v7x
topology: tpu7x:2x2x1
jax: 0.10.0
libtpu: 0.0.40
codegen_flags: <defaults>
</compile_context>

<pallas_src>
import jax
import jax.numpy as jnp
from jax.experimental import pallas as pl
from jax.experimental.pallas import tpu as pltpu

LANE = 128
IN_DIM = 36
H1 = 32
H2 = 64
OUT_DIM = 13


def _mlp_kernel(x_ref, w1_ref, w2_ref, w3_ref, b_ref, o_ref):
    # x block: (TB, 36), f32 or bf16 from the caller; MXU operands bf16,
    # accumulation + bias/ReLU in f32.
    x = x_ref[...].astype(jnp.bfloat16)
    b = b_ref[...]                                          # (3, 128) f32 packed biases

    h = jnp.dot(x, w1_ref[...], preferred_element_type=jnp.float32)
    h = jnp.maximum(h + b[0:1, :], 0.0)                     # (TB, 128); padded lanes stay 0

    h = jnp.dot(h.astype(jnp.bfloat16), w2_ref[...], preferred_element_type=jnp.float32)
    h = jnp.maximum(h + b[1:2, :], 0.0)                     # (TB, 128); padded lanes stay 0

    h = jnp.dot(h.astype(jnp.bfloat16), w3_ref[...], preferred_element_type=jnp.float32)
    # Narrow store: (TB, 13) output block. Masked vst per vreg row, but far
    # fewer HBM bytes than a padded 128-lane slab + wrapper slice.
    o_ref[...] = (h + b[2:3, :])[:, :OUT_DIM].astype(o_ref.dtype)


def _choose_batch_tile(B, block_b):
    if B < 8:
        return B                                  # full-extent block (always legal)
    tb = max(8, min(block_b, B))
    tb = (tb // 8) * 8                            # sublane rule; ragged last block is masked
    if B >= 16 and tb >= B:
        # Keep >= 2 grid steps so v7x can shard the "parallel" batch axis over
        # both TensorCores (no effect on v5e/v6e, which have a single TC).
        tb = ((pl.cdiv(B, 2) + 7) // 8) * 8
    return tb


def vtm_agent_dqn_forward(x, packed_params, *, block_b=4096):
    """x: (B, 36) float32 or bfloat16. Returns (B, 13) float32 Q-values."""
    w1p, w2p, w3p, bp = packed_params
    B = x.shape[0]
    tb = _choose_batch_tile(B, block_b)
    grid = (pl.cdiv(B, tb),)

    # Weights / biases: constant index_map -> resident in VMEM across grid steps.
    resident = lambda a: pl.BlockSpec(a.shape, lambda i: (0,) * a.ndim)

    cost = pl.CostEstimate(
        flops=2 * B * (IN_DIM * LANE + LANE * LANE + LANE * LANE),
        transcendentals=0,
        bytes_accessed=(B * (IN_DIM * x.dtype.itemsize + OUT_DIM * 4)
                        + w1p.nbytes + w2p.nbytes + w3p.nbytes + bp.nbytes),
    )

    return pl.pallas_call(
        _mlp_kernel,
        out_shape=jax.ShapeDtypeStruct((B, OUT_DIM), jnp.float32),
        grid_spec=pltpu.PrefetchScalarGridSpec(
            num_scalar_prefetch=0,
            grid=grid,
            in_specs=[
                pl.BlockSpec((tb, IN_DIM), lambda i: (i, 0)),   # x: pipelined over batch
                resident(w1p),
                resident(w2p),
                resident(w3p),
                resident(bp),
            ],
            out_specs=pl.BlockSpec((tb, OUT_DIM), lambda i: (i, 0)),
        ),
        compiler_params=pltpu.CompilerParams(
            dimension_semantics=("parallel",),        # v7x: shard batch over 2 TCs
            vmem_limit_bytes=32 * 1024 * 1024,        # safe on v7x (64 MiB physical)
        ),
        cost_estimate=cost,
    )(x, w1p, w2p, w3p, bp)


def init_params(key):
    """Deterministic init matching nn.Linear shapes (stored transposed: (in, out))."""
    k1, k2, k3, k4, k5, k6 = jax.random.split(key, 6)

    def uniform(k, shape, fan_in):
        bound = 1.0 / jnp.sqrt(fan_in)
        return jax.random.uniform(k, shape, jnp.float32, -bound, bound)

    w1 = uniform(k1, (IN_DIM, H1), float(IN_DIM))
    b1 = uniform(k2, (H1,), float(IN_DIM))
    w2 = uniform(k3, (H1, H2), float(H1))
    b2 = uniform(k4, (H2,), float(H1))
    w3 = uniform(k5, (H2, OUT_DIM), float(H2))
    b3 = uniform(k6, (OUT_DIM,), float(H2))
    return (w1, b1, w2, b2, w3, b3)


def pack_params(params):
    """Zero-pad weights to lane-dense 128-wide layout (bf16) and pack biases (f32)."""
    w1, b1, w2, b2, w3, b3 = params
    w1p = jnp.zeros((IN_DIM, LANE), jnp.float32).at[:, :H1].set(w1).astype(jnp.bfloat16)
    w2p = jnp.zeros((LANE, LANE), jnp.float32).at[:H1, :H2].set(w2).astype(jnp.bfloat16)
    w3p = jnp.zeros((LANE, LANE), jnp.float32).at[:H2, :OUT_DIM].set(w3).astype(jnp.bfloat16)
    bp = jnp.zeros((3, LANE), jnp.float32)
    bp = bp.at[0, :H1].set(b1).at[1, :H2].set(b2).at[2, :OUT_DIM].set(b3)
    return (w1p, w2p, w3p, bp)


def _reference_f32(x, params):
    w1, b1, w2, b2, w3, b3 = params
    h = jnp.maximum(x @ w1 + b1, 0.0)
    h = jnp.maximum(h @ w2 + b2, 0.0)
    return h @ w3 + b3


def _reference_bf16(x, params):
    """Mirrors the kernel's numerics: bf16 operands, f32 accumulation."""
    w1, b1, w2, b2, w3, b3 = params
    bf = lambda a: a.astype(jnp.bfloat16)
    h = jnp.maximum(jnp.dot(bf(x), bf(w1), preferred_element_type=jnp.float32) + b1, 0.0)
    h = jnp.maximum(jnp.dot(bf(h), bf(w2), preferred_element_type=jnp.float32) + b2, 0.0)
    return jnp.dot(bf(h), bf(w3), preferred_element_type=jnp.float32) + b3


if __name__ == "__main__":
    key = jax.random.PRNGKey(0)
    k_params, k_x1, k_x2, k_x3 = jax.random.split(key, 4)

    params = init_params(k_params)
    packed = pack_params(params)

    def check(x, out, tag):
        ref_bf16 = _reference_bf16(x.astype(jnp.float32), params)
        ref_f32 = _reference_f32(x.astype(jnp.float32), params)
        assert out.shape == (x.shape[0], OUT_DIM), (tag, out.shape)
        assert jnp.allclose(out, ref_bf16, atol=5e-3, rtol=5e-3), f"mismatch vs bf16 ref ({tag})"
        assert jnp.allclose(out, ref_f32, atol=5e-2, rtol=5e-2), f"mismatch vs f32 ref ({tag})"

    # Small batch: single grid step, full-extent-friendly.
    x_small = jax.random.normal(k_x1, (8, IN_DIM), dtype=jnp.float32)
    out_small = jax.block_until_ready(vtm_agent_dqn_forward(x_small, packed))
    check(x_small, out_small, "B=8 f32")

    # Medium batch with default block_b: exercises the >=2-grid-step cap (v7x path).
    x_med = jax.random.normal(k_x2, (24, IN_DIM), dtype=jnp.float32)
    out_med = jax.block_until_ready(vtm_agent_dqn_forward(x_med, packed))
    check(x_med, out_med, "B=24 f32")

    # Multi-step pipelined grid with a ragged last block (200 rows, 64-row tiles).
    x_big = jax.random.normal(k_x3, (200, IN_DIM), dtype=jnp.float32)
    out_big = jax.block_until_ready(vtm_agent_dqn_forward(x_big, packed, block_b=64))
    check(x_big, out_big, "B=200 ragged")

    # bf16 input path (halves input DMA bytes; numerics identical to bf16 ref).
    x_bf16 = x_small.astype(jnp.bfloat16)
    out_bf16 = jax.block_until_ready(vtm_agent_dqn_forward(x_bf16, packed))
    check(x_bf16, out_bf16, "B=8 bf16 input")

    print("KERNEL_OK")
</pallas_src>

<mosaic_0001>
module attributes {stable_mosaic.version = 11 : i64} {
  func.func @_mlp_kernel(%arg0: i32, %arg1: memref<8x36xf32, #tpu.memory_space<vmem>>, %arg2: memref<36x128xbf16, #tpu.memory_space<vmem>>, %arg3: memref<128x128xbf16, #tpu.memory_space<vmem>>, %arg4: memref<128x128xbf16, #tpu.memory_space<vmem>>, %arg5: memref<3x128xf32, #tpu.memory_space<vmem>>, %arg6: memref<8x13xf32, #tpu.memory_space<vmem>>) attributes {dimension_semantics = [#tpu.dimension_semantics<parallel>], iteration_bounds = array<i64: 1>, scalar_prefetch = 0 : i64, scratch_operands = 0 : i64, tpu.core_type = #tpu.core_type<tc>, window_params = [{transform_indices = @transform_0, window_bounds = array<i64: 8, 36>}, {pipeline_mode = #tpu.pipeline_mode<synchronous>, transform_indices = @transform_1, window_bounds = array<i64: 36, 128>}, {pipeline_mode = #tpu.pipeline_mode<synchronous>, transform_indices = @transform_2, window_bounds = array<i64: 128, 128>}, {pipeline_mode = #tpu.pipeline_mode<synchronous>, transform_indices = @transform_3, window_bounds = array<i64: 128, 128>}, {pipeline_mode = #tpu.pipeline_mode<synchronous>, transform_indices = @transform_4, window_bounds = array<i64: 3, 128>}, {transform_indices = @transform_5, window_bounds = array<i64: 8, 13>}]} {
    %c0 = arith.constant 0 : index
    %c0_0 = arith.constant 0 : index
    %0 = vector.load %arg1[%c0, %c0_0] : memref<8x36xf32, #tpu.memory_space<vmem>>, vector<8x36xf32>
    %1 = arith.truncf %0 : vector<8x36xf32> to vector<8x36xbf16>
    %c0_1 = arith.constant 0 : index
    %c0_2 = arith.constant 0 : index
    %2 = vector.load %arg5[%c0_1, %c0_2] : memref<3x128xf32, #tpu.memory_space<vmem>>, vector<3x128xf32>
    %c0_3 = arith.constant 0 : index
    %c0_4 = arith.constant 0 : index
    %3 = vector.load %arg2[%c0_3, %c0_4] : memref<36x128xbf16, #tpu.memory_space<vmem>>, vector<36x128xbf16>
    %cst = arith.constant dense<0.000000e+00> : vector<8x128xf32>
    %4 = tpu.matmul %1, %3, %cst {dimension_numbers = #tpu.dot_dimension_numbers<[1], [0], [0], [1], [0, 0, 1, 1], [], []>} : vector<8x36xbf16>, vector<36x128xbf16>, vector<8x128xf32> -> vector<8x128xf32>
    %5 = vector.extract_strided_slice %2 {offsets = [0, 0], sizes = [1, 128], strides = [1, 1]} : vector<3x128xf32> to vector<1x128xf32>
    %6 = vector.broadcast %5 : vector<1x128xf32> to vector<8x128xf32>
    %7 = arith.addf %4, %6 : vector<8x128xf32>
    %cst_5 = arith.constant 0.000000e+00 : f32
    %8 = vector.broadcast %cst_5 : f32 to vector<8x128xf32>
    %9 = arith.maximumf %7, %8 : vector<8x128xf32>
    %10 = arith.truncf %9 : vector<8x128xf32> to vector<8x128xbf16>
    %c0_6 = arith.constant 0 : index
    %c0_7 = arith.constant 0 : index
    %11 = vector.load %arg3[%c0_6, %c0_7] : memref<128x128xbf16, #tpu.memory_space<vmem>>, vector<128x128xbf16>
    %cst_8 = arith.constant dense<0.000000e+00> : vector<8x128xf32>
    %12 = tpu.matmul %10, %11, %cst_8 {dimension_numbers = #tpu.dot_dimension_numbers<[1], [0], [0], [1], [0, 0, 1, 1], [], []>} : vector<8x128xbf16>, vector<128x128xbf16>, vector<8x128xf32> -> vector<8x128xf32>
    %13 = vector.extract_strided_slice %2 {offsets = [1, 0], sizes = [1, 128], strides = [1, 1]} : vector<3x128xf32> to vector<1x128xf32>
    %14 = vector.broadcast %13 : vector<1x128xf32> to vector<8x128xf32>
    %15 = arith.addf %12, %14 : vector<8x128xf32>
    %cst_9 = arith.constant 0.000000e+00 : f32
    %16 = vector.broadcast %cst_9 : f32 to vector<8x128xf32>
    %17 = arith.maximumf %15, %16 : vector<8x128xf32>
    %18 = arith.truncf %17 : vector<8x128xf32> to vector<8x128xbf16>
    %c0_10 = arith.constant 0 : index
    %c0_11 = arith.constant 0 : index
    %19 = vector.load %arg4[%c0_10, %c0_11] : memref<128x128xbf16, #tpu.memory_space<vmem>>, vector<128x128xbf16>
    %cst_12 = arith.constant dense<0.000000e+00> : vector<8x128xf32>
    %20 = tpu.matmul %18, %19, %cst_12 {dimension_numbers = #tpu.dot_dimension_numbers<[1], [0], [0], [1], [0, 0, 1, 1], [], []>} : vector<8x128xbf16>, vector<128x128xbf16>, vector<8x128xf32> -> vector<8x128xf32>
    %21 = vector.extract_strided_slice %2 {offsets = [2, 0], sizes = [1, 128], strides = [1, 1]} : vector<3x128xf32> to vector<1x128xf32>
    %22 = vector.broadcast %21 : vector<1x128xf32> to vector<8x128xf32>
    %23 = arith.addf %20, %22 : vector<8x128xf32>
    %24 = vector.extract_strided_slice %23 {offsets = [0, 0], sizes = [8, 13], strides = [1, 1]} : vector<8x128xf32> to vector<8x13xf32>
    %c0_13 = arith.constant 0 : index
    %c0_14 = arith.constant 0 : index
    %25 = vector.load %arg6[%c0_13, %c0_14] : memref<8x13xf32, #tpu.memory_space<vmem>>, vector<8x13xf32>
    tpu.vector_store %arg6[%c0_13, %c0_14], %24 {strides = array<i32>} : memref<8x13xf32, #tpu.memory_space<vmem>>, vector<8x13xf32>,
    return
  }
  func.func @transform_0(%arg0: i32) -> (i32, i32) {
    %c0_i32 = arith.constant 0 : i32
    %c0_i32_0 = arith.constant 0 : i32
    return %arg0, %c0_i32 : i32, i32
  }
  func.func @transform_1(%arg0: i32) -> (i32, i32) {
    %c0_i32 = arith.constant 0 : i32
    %c0_i32_0 = arith.constant 0 : i32
    %c0_i32_1 = arith.constant 0 : i32
    return %c0_i32, %c0_i32_0 : i32, i32
  }
  func.func @transform_2(%arg0: i32) -> (i32, i32) {
    %c0_i32 = arith.constant 0 : i32
    %c0_i32_0 = arith.constant 0 : i32
    %c0_i32_1 = arith.constant 0 : i32
    return %c0_i32, %c0_i32_0 : i32, i32
  }
  func.func @transform_3(%arg0: i32) -> (i32, i32) {
    %c0_i32 = arith.constant 0 : i32
    %c0_i32_0 = arith.constant 0 : i32
    %c0_i32_1 = arith.constant 0 : i32
    return %c0_i32, %c0_i32_0 : i32, i32
  }
  func.func @transform_4(%arg0: i32) -> (i32, i32) {
    %c0_i32 = arith.constant 0 : i32
    %c0_i32_0 = arith.constant 0 : i32
    %c0_i32_1 = arith.constant 0 : i32
    return %c0_i32, %c0_i32_0 : i32, i32
  }
  func.func @transform_5(%arg0: i32) -> (i32, i32) {
    %c0_i32 = arith.constant 0 : i32
    %c0_i32_0 = arith.constant 0 : i32
    return %arg0, %c0_i32 : i32, i32
  }
}

</mosaic_0001>

<bundles_post_ra>
// kernel: tpu_custom_call.1
= control target key start
LH: loop header
LB: loop body
LE: loop exit
PB: predicated region body
PF: predicated region fallthrough
CT: control target
= control target key end

     0   :  { %10 = vsyncpa [#allocation3], 0  ;;  %s763_s0 = inlined_call_operand.hbm [shape: f32[8,36], index: 0, kind: input, shape index: {}]   ;;  %s764_s1 = inlined_call_operand.hbm [shape: bf16[36,128], index: 1, kind: input, shape index: {}]   ;;  %s765_s2 = inlined_call_operand.hbm [shape: bf16[128,128], index: 2, kind: input, shape index: {}]   ;;  %s766_s3 = inlined_call_operand.hbm [shape: bf16[128,128], index: 3, kind: input, shape index: {}]   ;;  %s767_s4 = inlined_call_operand.vmem [shape: f32[3,128], index: 4, kind: input, shape index: {}]   ;;  %s768_s5 = inlined_call_operand.hbm [shape: f32[8,13], index: 5, kind: output, shape index: {}]  }
   0x1   :  { %11 = vsyncpa [#allocation6], 0 }
   0x2   :  { %12 = vsyncpa [#allocation9], 0 }
   0x3   :  { %13 = vsyncpa [#allocation4], 0  ;;  %s627_s18 = smov [#allocation5]   ;;  %s509_s22 = scalar_lea.hbm %s764_s1, 320 }
   0x4   :  { %s29_s19 = sshll.u32 %s627_s18, 4  ;;  %p510_p0 = scmp.ne.s32.totalorder %s764_s1, %s509_s22  ;;  %s30_s19 = int_to_ptr.vmem [resolvable:$true] %s29_s19 }
   0x5   :  { %p513_p1 = scmp.lt.u32.totalorder %s509_s22, %s764_s1 }
   0x7   :  { %p515_p2 = pnand %p513_p1, %p510_p0 }
   0x9   :  { %518 = shalt.err (!%p515_p2)
}
   0xa   :  { %s519_s27 = scalar_lea.vmem %s30_s19, 320  ;;  %p524_p4 = scmp.lt.s32.totalorder %s30_s19, %s30_s19 }
   0xb   :  { %p520_p3 = scmp.ne.s32.totalorder %s30_s19, %s519_s27  ;;  %p525_p5 = scmp.lt.s32.totalorder %s519_s27, %s519_s27 }
   0xd   :  { %p526_p6 = por %p525_p5, %p524_p4 }
   0xf   :  { %p527_p7 = pnand %p526_p6, %p520_p3 }
  0x11   :  { %530 = shalt.err (!%p527_p7)
}
  0x12   :  { %s628_s28 = smov 64   ;;  %s629_s29 = smov 4  }
  0x13   :  { %35 = dma.hbm_to_vmem [thread:$0]  %s764_s1, 320, %s30_s19, [#allocation6], %s628_s28, %s628_s28, %s629_s29  }
  0x14   :  { %s630_s7 = smov [#allocation2]   ;;  %s631_s9 = smov [#allocation7]  }
  0x15   :  { %s20_s8 = sshll.u32 %s630_s7, 4  ;;  %s41_s10 = sshll.u32 %s631_s9, 4  ;;  %s21_s8 = int_to_ptr.vmem [resolvable:$true] %s20_s8  ;;  %s42_s10 = int_to_ptr.vmem [resolvable:$true] %s41_s10 }
  0x16   :  { %s531_s13 = scalar_lea.hbm %s763_s0, 128 }
  0x17   :  { %p532_p8 = scmp.ne.s32.totalorder %s763_s0, %s531_s13  ;;  %p535_p9 = scmp.lt.u32.totalorder %s531_s13, %s763_s0 }
  0x19   :  { %p537_p10 = pnand %p535_p9, %p532_p8 }
  0x1b   :  { %540 = shalt.err (!%p537_p10)
}
  0x1c   :  { %s541_s1 = scalar_lea.vmem %s21_s8, 128  ;;  %p546_p12 = scmp.lt.s32.totalorder %s21_s8, %s21_s8 }
  0x1d   :  { %p542_p11 = scmp.ne.s32.totalorder %s21_s8, %s541_s1  ;;  %p547_p13 = scmp.lt.s32.totalorder %s541_s1, %s541_s1 }
  0x1f   :  { %p548_p0 = por %p547_p13, %p546_p12 }
  0x21   :  { %p549_p1 = pnand %p548_p0, %p542_p11 }
  0x23   :  { %552 = shalt.err (!%p549_p1)
}
  0x24   :  { %23 = dma.hbm_to_vmem [thread:$0]  %s763_s0, 128, %s21_s8, [#allocation3]  }
  0x25   :  { %s553_s22 = scalar_lea.hbm %s765_s2, 1024 }
  0x26   :  { %p554_p2 = scmp.ne.s32.totalorder %s765_s2, %s553_s22  ;;  %p557_p3 = scmp.lt.u32.totalorder %s553_s22, %s765_s2 }
  0x28   :  { %p559_p4 = pnand %p557_p3, %p554_p2 }
  0x2a   :  { %562 = shalt.err (!%p559_p4)
}
  0x2b   :  { %s563_s27 = scalar_lea.vmem %s42_s10, 1024  ;;  %p568_p6 = scmp.lt.s32.totalorder %s42_s10, %s42_s10 }
  0x2c   :  { %p564_p5 = scmp.ne.s32.totalorder %s42_s10, %s563_s27  ;;  %p569_p7 = scmp.lt.s32.totalorder %s563_s27, %s563_s27 }
  0x2e   :  { %p570_p8 = por %p569_p7, %p568_p6 }
  0x30   :  { %p571_p9 = pnand %p570_p8, %p564_p5 }
  0x32   :  { %574 = shalt.err (!%p571_p9)
}
  0x33   :  { %47 = dma.hbm_to_vmem [thread:$0]  %s765_s2, 1024, %s42_s10, [#allocation6], %s628_s28, %s628_s28, %s629_s29  }
  0x34   :  { %s632_s6 = smov [#allocation8]   ;;  %s575_s11 = scalar_lea.hbm %s766_s3, 1024 }
  0x35   :  { %s53_s7 = sshll.u32 %s632_s6, 4  ;;  %p576_p10 = scmp.ne.s32.totalorder %s766_s3, %s575_s11  ;;  %s54_s7 = int_to_ptr.vmem [resolvable:$true] %s53_s7 }
  0x36   :  { %p579_p11 = scmp.lt.u32.totalorder %s575_s11, %s766_s3 }
  0x38   :  { %p581_p12 = pnand %p579_p11, %p576_p10 }
  0x3a   :  { %584 = shalt.err (!%p581_p12)
}
  0x3b   :  { %s585_s16 = scalar_lea.vmem %s54_s7, 1024  ;;  %p590_p0 = scmp.lt.s32.totalorder %s54_s7, %s54_s7 }
  0x3c   :  { %p586_p13 = scmp.ne.s32.totalorder %s54_s7, %s585_s16  ;;  %p591_p1 = scmp.lt.s32.totalorder %s585_s16, %s585_s16 }
  0x3e   :  { %p592_p2 = por %p591_p1, %p590_p0 }
  0x40   :  { %p593_p3 = pnand %p592_p2, %p586_p13 }
  0x42   :  { %596 = shalt.err (!%p593_p3)
}
  0x43   :  { %59 = dma.hbm_to_vmem [thread:$0]  %s766_s3, 1024, %s54_s7, [#allocation9], %s628_s28, %s628_s28, %s629_s29  }
  0x44   :  { %619 = dma.done.wait [#allocation3], 128  }
  0x45   :  { %620 = vsyncadd [#allocation3], 4294967168 }
  0x46   :  { %621 = dma.done.wait [#allocation6], 1344  }
  0x47   :  { %622 = vsyncadd [#allocation6], 4294965952 }
  0x48   :  { %623 = dma.done.wait [#allocation9], 1024  }
  0x49   :  { %624 = vsyncadd [#allocation9], 4294966272  ;;  %v633_v0 = vmov 0.0   ;;  %vm634_vm0 = vmmov 0   ;;  %v490_v1 = vld [vmem:[#allocation5] sm:$0xff]   ;;  %v491_v2 = vld [vmem:[#allocation5 + $0x8] sm:$0xff]   ;;  %v83_v21 = vlaneseq }
  0x4a   :  { %431 = vmatprep.subr.bf16.mxu0 %v633_v0  ;;  %437 = vmatprep.mubr.msk.bf16.mxu0 %vm634_vm0, %v633_v0  ;;  %v492_v3 = vld [vmem:[#allocation5 + $0x10] ss:$0 sps:$4 sm:$0x33]   ;;  %v493_v4 = vld [vmem:[#allocation7] sm:$0xff]   ;;  %vm106_vm1 = vcmask 1041408   ;;  %v494_v5 = vld [vmem:[#allocation7 + $0x8] sm:$0xff]  }
  0x4b   :  { %441 = vmatprep.subr.bf16.mxu1 %v633_v0  ;;  %457 = vmatprep.mubr.msk.bf16.mxu1 %vm634_vm0, %v633_v0  ;;  %v75_v6 = vld [vmem:[#allocation2] sm:$0xff]  ;;  %v108_v7 = vsel %vm106_vm1, %v492_v3, 0  ;;  %vm102_vm2 = vcmask 293888   ;;  %v495_v9 = vld [vmem:[#allocation7 + $0x10] sm:$0xff]   ;;  %v496_v10 = vld [vmem:[#allocation7 + $0x18] sm:$0xff]   ;;  %v84_v22 = vshrl.u32 %v83_v21, 7 }
  0x4c   :  { %432 = vmatpush3.bf16.msra.mxu0 %v490_v1  ;;  %442 = vmatpush3.bf16.msra.mxu1 %v493_v4  ;;  %v76_v8 = vpack.c.bf16 %v75_v6, %v75_v6  ;;  %v497_v11 = vld [vmem:[#allocation7 + $0x20] sm:$0xff]   ;;  %v498_v12 = vld [vmem:[#allocation7 + $0x28] sm:$0xff]   ;;  %v499_v13 = vld [vmem:[#allocation7 + $0x30] sm:$0xff]   ;;  %vm370_vm3 = vcmask 105472  }
  0x4d   :  { %433 = vmatprep.subr.bf16.mxu0 %v633_v0  ;;  %443 = vmatprep.subr.bf16.mxu1 %v633_v0  ;;  %v500_v14 = vld [vmem:[#allocation7 + $0x38] sm:$0xff]   ;;  %v501_v15 = vld [vmem:[#allocation8] sm:$0xff]   ;;  %v502_v16 = vld [vmem:[#allocation8 + $0x8] sm:$0xff]   ;;  %v85_v23 = vsub.s32 0, %v84_v22  ;;  %v170_v35 = vsub.s32 1, %v84_v22  ;;  %v280_v44 = vsub.s32 2, %v84_v22 }
  0x4e   :  { %v503_v17 = vld [vmem:[#allocation8 + $0x10] sm:$0xff]   ;;  %v504_v18 = vld [vmem:[#allocation8 + $0x18] sm:$0xff]   ;;  %v505_v19 = vld [vmem:[#allocation8 + $0x20] sm:$0xff]  }
  0x4f   :  { %v506_v20 = vld [vmem:[#allocation8 + $0x28] sm:$0xff]   ;;  %v77_v24 = vld [vmem:[%s767_s4] sm:$0x7]  ;;  %v507_v33 = vld [vmem:[#allocation8 + $0x30] sm:$0xff]   ;;  %s635_s4 = smov [#allocation10]  }
  0x50   :  { %434 = vmatpush3.bf16.msra.mxu0 %v491_v2  ;;  %444 = vmatpush3.bf16.msra.mxu1 %v494_v5  ;;  %v86_v25 = vrot.slane %v77_v24, %v85_v23  ;;  %v508_v34 = vld [vmem:[#allocation8 + $0x38] sm:$0xff]   ;;  %v171_v36 = vrot.slane %v77_v24, %v170_v35  ;;  %v281_v45 = vrot.slane %v77_v24, %v280_v44  ;;  %s378_s29 = sshll.u32 %s635_s4, 4  ;;  %s379_s29 = int_to_ptr.vmem [resolvable:$true] %s378_s29 }
  0x51   :  { %435 = vmatprep.subr.bf16.mxu0 %v633_v0  ;;  %445 = vmatprep.subr.bf16.mxu1 %v633_v0  ;;  %s597_s17 = scalar_lea.vmem %s379_s29, 128  ;;  %p602_p5 = scmp.lt.s32.totalorder %s379_s29, %s379_s29 }
  0x52   :  { %p598_p4 = scmp.ne.s32.totalorder %s379_s29, %s597_s17  ;;  %p603_p6 = scmp.lt.s32.totalorder %s597_s17, %s597_s17 }
  0x54   :  { %436 = vmatpush3.bf16.msra.mxu0 %v108_v7  ;;  %446 = vmatpush3.bf16.msra.mxu1 %v495_v9  ;;  %p604_p7 = por %p603_p6, %p602_p5 }
  0x55   :  { %461 = vmatprep.subr.bf16.mxu0 %v633_v0  ;;  %447 = vmatprep.subr.bf16.mxu1 %v633_v0 }
  0x56   :  { %p605_p8 = pnand %p604_p7, %p598_p4 }
  0x57   :  { %438 = vmatmul.mubr.msk.bf16.vlgmr.msra.gmra.mrb[0].mxu0 %vm102_vm2, %v76_v8 }
  0x58   :  { %477 = vmatprep.mubr.msk.bf16.mxu0 %vm634_vm0, %v633_v0  ;;  %448 = vmatpush3.bf16.msra.mxu1 %v496_v10 }
  0x59   :  { %449 = vmatprep.subr.bf16.mxu1 %v633_v0  ;;  %462 = vmatpush3.bf16.msra.mxu0 %v501_v15 }
  0x5a   :  { %463 = vmatprep.subr.bf16.mxu0 %v633_v0 }
  0x5c   :  { %450 = vmatpush3.bf16.msra.mxu1 %v497_v11 }
  0x5d   :  { %451 = vmatprep.subr.bf16.mxu1 %v633_v0  ;;  %464 = vmatpush3.bf16.msra.mxu0 %v502_v16 }
  0x5e   :  { %465 = vmatprep.subr.bf16.mxu0 %v633_v0 }
  0x60   :  { %452 = vmatpush3.bf16.msra.mxu1 %v498_v12 }
  0x61   :  { %453 = vmatprep.subr.bf16.mxu1 %v633_v0  ;;  %466 = vmatpush3.bf16.msra.mxu0 %v503_v17 }
  0x62   :  { %467 = vmatprep.subr.bf16.mxu0 %v633_v0 }
  0x64   :  { %454 = vmatpush3.bf16.msra.mxu1 %v499_v13 }
  0x65   :  { %455 = vmatprep.subr.bf16.mxu1 %v633_v0  ;;  %468 = vmatpush3.bf16.msra.mxu0 %v504_v18 }
  0x66   :  { %469 = vmatprep.subr.bf16.mxu0 %v633_v0 }
  0x68   :  { %456 = vmatpush3.bf16.msra.mxu1 %v500_v14 }
  0x69   :  { %470 = vmatpush3.bf16.msra.mxu0 %v505_v19 }
  0x6a   :  { %471 = vmatprep.subr.bf16.mxu0 %v633_v0 }
  0x6d   :  { %472 = vmatpush3.bf16.msra.mxu0 %v506_v20 }
  0x6e   :  { %473 = vmatprep.subr.bf16.mxu0 %v633_v0 }
  0x71   :  { %474 = vmatpush3.bf16.msra.mxu0 %v507_v33 }
  0x72   :  { %475 = vmatprep.subr.bf16.mxu0 %v633_v0 }
  0x75   :  { %476 = vmatpush3.bf16.msra.mxu0 %v508_v34 }
 0x12a   :  { %v144_v26 = vpop.f32.mrb[0].mxu0 }
 0x12b   :  { %v145_v27 = vadd.f32 %v144_v26, %v86_v25  ;;  %v439_v28 = vpop.f32.mrb[1].mxu0 }
 0x12c   :  { %v147_v29 = vpop.f32.mrb[2].mxu0 }
 0x12d   :  { %v150_v30 = vmax.f32 %v145_v27, 0.0  ;;  %v440_v31 = vpop.f32.mrb[3].mxu0 }
 0x12f   :  { %v151_v32 = vpack.c.bf16 %v150_v30, %v150_v30 }
 0x131   :  { %458 = vmatmul.mubr.bf16.vlgmr.msra.gmra.mrb[0].mxu1 %v151_v32 }
 0x204   :  { %v254_v37 = vpop.f32.mrb[0].mxu1 }
 0x205   :  { %v255_v38 = vadd.f32 %v254_v37, %v171_v36  ;;  %v459_v39 = vpop.f32.mrb[1].mxu1 }
 0x206   :  { %v257_v40 = vpop.f32.mrb[2].mxu1 }
 0x207   :  { %v260_v41 = vmax.f32 %v255_v38, 0.0  ;;  %v460_v42 = vpop.f32.mrb[3].mxu1 }
 0x209   :  { %v261_v43 = vpack.c.bf16 %v260_v41, %v260_v41 }
 0x20b   :  { %478 = vmatmul.mubr.bf16.vlgmr.msra.gmra.mrb[4].mxu0 %v261_v43 }
 0x2de   :  { %v364_v46 = vpop.f32.mrb[4].mxu0 }
 0x2df   :  { %v365_v47 = vadd.f32 %v364_v46, %v281_v45  ;;  %v479_v48 = vpop.f32.mrb[5].mxu0 }
 0x2e0   :  { %v367_v49 = vpop.f32.mrb[6].mxu0 }
 0x2e1   :  { %v480_v50 = vpop.f32.mrb[7].mxu0  ;;  %371 = vst.msk [vmem:[#allocation10] sm:$0xff] %vm370_vm3, %v365_v47 }
 0x2e2   :  { %608 = shalt.err (!%p605_p8)
}
 0x2e3   :  { %s609_s19 = scalar_lea.hbm %s768_s5, 128 }
 0x2e4   :  { %p610_p9 = scmp.ne.s32.totalorder %s768_s5, %s609_s19  ;;  %p613_p10 = scmp.lt.u32.totalorder %s609_s19, %s768_s5 }
 0x2e6   :  { %p615_p11 = pnand %p613_p10, %p610_p9 }
 0x2e8   :  { %618 = shalt.err (!%p615_p11)
}
 0x2e9   :  { %381 = dma.vmem_to_hbm [thread:$0]  %s379_s29, 128, %s768_s5, [#allocation4]  }
 0x2ea   :  { %625 = dma.done.wait [#allocation4], 128  }
 0x2eb   :  { %626 = vsyncadd [#allocation4], 4294967168 }
 0x2ec   :  { %385 = vsyncpa [#allocation3], 1 }
 0x2ed   :  { %386 = vsyncpa [#allocation6], 1 }
 0x2ee   :  { %387 = vsyncpa [#allocation9], 1 }
 0x2ef   :  { %388 = vsyncpa [#allocation4], 1 }

</bundles_post_ra>
